<compile_context>
chip_gen: v6e
topology: v6e:2x2x1
jax: 0.10.0
libtpu: 0.0.40
codegen_flags: <defaults>
</compile_context>

<pallas_src>
import math
from functools import partial

import jax
import jax.numpy as jnp
from jax.experimental import pallas as pl
from jax.experimental.pallas import tpu as pltpu


def _add_one_kernel(x_ref, o_ref):
    # Pure VPU elementwise add over the whole VMEM tile.
    o_ref[...] = x_ref[...] + jnp.asarray(1, dtype=x_ref.dtype)


# Widest lane dim preferred (lane-dense, unmasked full-width vst).
_LANE_CANDIDATES = (4096, 2048, 1024, 512, 256, 128)
_MIB = 1024 * 1024


def _vmem_capacity_bytes() -> int:
    # Generation-aware sizing; fall back to the smallest capacity (v7x: 64 MiB)
    # if the query is unavailable, which is safe on every generation.
    try:
        return int(pltpu.get_tpu_info().vmem_capacity_bytes)
    except Exception:
        return 64 * _MIB


@partial(jax.jit, donate_argnums=0)
def _add_one_impl(x: jax.Array) -> jax.Array:
    orig_shape = x.shape
    dtype = x.dtype
    n = int(math.prod(orig_shape)) if orig_shape else 1
    itemsize = jnp.dtype(dtype).itemsize
    # dtype-aware sublane packing: 8 rows (4-byte), 16 (2-byte), 32 (1-byte).
    sub = max(8, 32 // max(1, itemsize))

    # Block-size / VMEM budget (double-buffered input + output => 4x block).
    vmem_phys = _vmem_capacity_bytes()
    budget = max(32 * _MIB, vmem_phys - 16 * _MIB)          # keep headroom
    target_block_bytes = min(8 * _MIB, budget // 4)         # ~8 MiB blocks
    vmem_limit = int(min(budget, 4 * target_block_bytes + 16 * _MIB))

    cost = pl.CostEstimate(
        flops=n, transcendentals=0, bytes_accessed=2 * n * itemsize
    )
    cparams = pltpu.CompilerParams(
        dimension_semantics=("parallel",),
        vmem_limit_bytes=vmem_limit,
    )

    # Prefer the widest lane width that (a) divides n exactly and (b) leaves
    # rows >= sublane packing so vregs are fully populated.
    lanes = None
    for cand in _LANE_CANDIDATES:
        if n % cand == 0 and (n // cand) >= sub:
            lanes = cand
            break
    if lanes is None:
        for cand in _LANE_CANDIDATES:
            if n % cand == 0:
                lanes = cand
                break

    flat = x.reshape(-1)

    if lanes is None:
        # Ragged fallback: tiled 1D kernel, partial last block masked by
        # Pallas. No jnp.pad / output slice => no extra HBM passes.
        chunk = 8 * 128
        elems = max(chunk, ((target_block_bytes // itemsize) // chunk) * chunk)
        if elems >= n:
            bn, grid = n, 1          # full-extent block: always legal
        else:
            bn, grid = elems, pl.cdiv(n, elems)
        out_flat = pl.pallas_call(
            _add_one_kernel,
            out_shape=jax.ShapeDtypeStruct((n,), dtype),
            grid=(grid,),
            in_specs=[pl.BlockSpec((bn,), lambda i: (i,))],
            out_specs=pl.BlockSpec((bn,), lambda i: (i,)),
            compiler_params=cparams,
            cost_estimate=cost,
            input_output_aliases={0: 0},
        )(flat)
        return out_flat.reshape(orig_shape)

    rows = n // lanes
    x2d = flat.reshape(rows, lanes)

    # Row tile: ~target_block_bytes per block, rounded to the sublane packing.
    tr = target_block_bytes // (lanes * itemsize)
    tr = max(sub, (tr // sub) * sub)
    if tr >= rows:
        if rows >= 2 * sub:
            # Keep >=2 grid steps so "parallel" can shard over both v7x TCs
            # even when the whole array would fit a single block.
            tr = max(sub, (((rows + 1) // 2) // sub) * sub)
        else:
            tr = rows  # full-extent block along rows (always legal)
    grid_rows = pl.cdiv(rows, tr)  # partial last block handled by Pallas

    out2d = pl.pallas_call(
        _add_one_kernel,
        out_shape=jax.ShapeDtypeStruct((rows, lanes), dtype),
        grid=(grid_rows,),
        in_specs=[pl.BlockSpec((tr, lanes), lambda i: (i, 0))],
        out_specs=pl.BlockSpec((tr, lanes), lambda i: (i, 0)),
        compiler_params=cparams,
        cost_estimate=cost,
        # In-place: output HBM buffer aliases the input (made real by the
        # jit-level donation of x).
        input_output_aliases={0: 0},
    )(x2d)
    return out2d.reshape(orig_shape)


def add_one(x: jax.Array) -> jax.Array:
    """Forward pass of the module: x + 1. NOTE: x's buffer is donated."""
    if x.size == 0:
        return x
    return _add_one_impl(x)


if __name__ == "__main__":
    key = jax.random.PRNGKey(0)
    # Small NCHW-like input consistent with a generic forward(input).
    x = jax.random.normal(key, (2, 4, 16, 16), dtype=jnp.float32)

    # Reference computed BEFORE the call, since add_one donates x's buffer.
    expected = x + 1.0
    jax.block_until_ready(expected)
    in_shape, in_dtype = x.shape, x.dtype

    y = add_one(x)
    jax.block_until_ready(y)

    assert y.shape == in_shape and y.dtype == in_dtype
    assert jnp.allclose(y, expected, atol=1e-6, rtol=1e-6)
    print("KERNEL_OK")
</pallas_src>

<mosaic_0001>
module attributes {stable_mosaic.version = 11 : i64} {
  func.func @_add_one_kernel(%arg0: i32, %arg1: memref<8x256xf32, #tpu.memory_space<vmem>>, %arg2: memref<8x256xf32, #tpu.memory_space<vmem>>) attributes {dimension_semantics = [#tpu.dimension_semantics<parallel>], iteration_bounds = array<i64: 1>, scalar_prefetch = 0 : i64, scratch_operands = 0 : i64, tpu.core_type = #tpu.core_type<tc>, window_params = [{transform_indices = @transform_0, window_bounds = array<i64: 8, 256>}, {transform_indices = @transform_1, window_bounds = array<i64: 8, 256>}]} {
    %c0 = arith.constant 0 : index
    %c0_0 = arith.constant 0 : index
    %0 = vector.load %arg1[%c0, %c0_0] : memref<8x256xf32, #tpu.memory_space<vmem>>, vector<8x256xf32>
    %cst = arith.constant 1.000000e+00 : f32
    %1 = vector.broadcast %cst : f32 to vector<8x256xf32>
    %2 = arith.addf %0, %1 : vector<8x256xf32>
    %c0_1 = arith.constant 0 : index
    %c0_2 = arith.constant 0 : index
    %3 = vector.load %arg2[%c0_1, %c0_2] : memref<8x256xf32, #tpu.memory_space<vmem>>, vector<8x256xf32>
    tpu.vector_store %arg2[%c0_1, %c0_2], %2 {strides = array<i32>} : memref<8x256xf32, #tpu.memory_space<vmem>>, vector<8x256xf32>,
    return
  }
  func.func @transform_0(%arg0: i32) -> (i32, i32) {
    %c0_i32 = arith.constant 0 : i32
    %c0_i32_0 = arith.constant 0 : i32
    return %arg0, %c0_i32 : i32, i32
  }
  func.func @transform_1(%arg0: i32) -> (i32, i32) {
    %c0_i32 = arith.constant 0 : i32
    %c0_i32_0 = arith.constant 0 : i32
    return %arg0, %c0_i32 : i32, i32
  }
}

</mosaic_0001>

<bundles_post_ra>
// kernel: _add_one_impl.1
= control target key start
LH: loop header
LB: loop body
LE: loop exit
PB: predicated region body
PF: predicated region fallthrough
CT: control target
= control target key end

     0   :  { %s40_s0 = inlined_call_operand.vmem [shape: f32[8,256], index: 0, kind: input, shape index: {}, may-alias: {0,1}]   ;;  %s41_s1 = inlined_call_operand.vmem [shape: f32[8,256], index: 1, kind: output, shape index: {}, may-alias: {0,1}]  }
   0x1   :  { %v8_v0 = vld [vmem:[%s40_s0] sm:$0xff]  ;;  %v9_v1 = vld [vmem:[%s40_s0 + $0x8] sm:$0xff] }
   0x2   :  { %v10_v2 = vadd.f32 1.0, %v8_v0  ;;  %v11_v3 = vadd.f32 1.0, %v9_v1 }
   0x4   :  { %12 = vst [vmem:[%s41_s1] sm:$0xff] %v10_v2  ;;  %13 = vst [vmem:[%s41_s1 + $0x8] sm:$0xff] %v11_v3 }

</bundles_post_ra>
